<compile_context>
chip_gen: v5e
topology: v5e:2x2
jax: 0.10.0
libtpu: 0.0.40
codegen_flags: <defaults>
</compile_context>

<pallas_src>
import functools

import jax
import jax.numpy as jnp
from jax.experimental import pallas as pl
from jax.experimental.pallas import tpu as pltpu


def _round_up(n, m):
    return ((n + m - 1) // m) * m


def _sage_fused_kernel(*refs, n_layers):
    """Fused n_layers-deep SAGEConv('mean') forward for ONE graph of the batch.

    refs = (x, A_0..A_{L-1}, Wself_0..Wself_{L-1}, Wneigh_0..Wneigh_{L-1},
            b_0..b_{L-1}, out)

      x        : (N_pad, F_pad)   bf16  padded input features (batch dim squeezed)
      A_l      : (N_pad, N_pad)   bf16  padded mean-normalized adjacency
      Wself_l  : (F_pad, F_pad)   bf16  self projection   (in x out, zero-padded)
      Wneigh_l : (F_pad, F_pad)   bf16  neighbor projection
      b_l      : (1, F_pad)       f32   padded bias
      out      : (N_pad, F_pad)   f32   padded last-layer output

    Correctness invariant for padded rows: every A_l MUST be explicitly zero in
    padded rows/cols (cols >= n_src_l). Then garbage rows of h (which do pick up
    bias + ReLU) never feed back into real rows and are sliced off outside.
    """
    x_ref = refs[0]
    a_refs = refs[1:1 + n_layers]
    ws_refs = refs[1 + n_layers:1 + 2 * n_layers]
    wn_refs = refs[1 + 2 * n_layers:1 + 3 * n_layers]
    b_refs = refs[1 + 3 * n_layers:1 + 4 * n_layers]
    o_ref = refs[1 + 4 * n_layers]

    h = x_ref[...]  # bf16 (N_pad, F_pad)
    for l in range(n_layers):
        # mean of edge-weighted neighbor messages == A @ h  (MXU, f32 acc)
        h_neigh = jnp.dot(a_refs[l][...], h, preferred_element_type=jnp.float32)

        # self + neighbor projections as two dots (no per-layer concat copy)
        out = (
            jnp.dot(h, ws_refs[l][...], preferred_element_type=jnp.float32)
            + jnp.dot(h_neigh.astype(jnp.bfloat16), wn_refs[l][...],
                      preferred_element_type=jnp.float32)
            + b_refs[l][...]
        )
        if l != n_layers - 1:
            # TODO(synk): nn.Dropout(0.5) omitted (eval semantics).
            h = jnp.maximum(out, 0.0).astype(jnp.bfloat16)
        else:
            o_ref[...] = out.astype(o_ref.dtype)


@jax.jit
def sage_forward_padded(x_p, a_p, ws_p, wn_p, b_p):
    """Batched fused forward on already padded & bf16-cast inputs.

    x_p  : (B, N_pad, F_pad) bf16
    a_p  : list (per layer) of (B, N_pad, N_pad) bf16
    ws_p : list of (F_pad, F_pad) bf16   (self weights)
    wn_p : list of (F_pad, F_pad) bf16   (neighbor weights)
    b_p  : list of (1, F_pad) f32
    returns padded (B, N_pad, F_pad) f32 last-layer output.
    """
    B, n_pad, f_pad = x_p.shape
    n_layers = len(a_p)

    inputs = [x_p] + list(a_p) + list(ws_p) + list(wn_p) + list(b_p)

    # per-graph arrays: leading batch dim squeezed, one graph per grid step
    per_graph = lambda last: pl.BlockSpec((None, n_pad, last), lambda b: (b, 0, 0))
    # shared params: same block for every grid step
    shared = lambda shape: pl.BlockSpec(shape, lambda b: tuple(0 for _ in shape))

    in_specs = (
        [per_graph(f_pad)]
        + [per_graph(n_pad)] * n_layers
        + [shared((f_pad, f_pad))] * (2 * n_layers)
        + [shared((1, f_pad))] * n_layers
    )

    return pl.pallas_call(
        functools.partial(_sage_fused_kernel, n_layers=n_layers),
        out_shape=jax.ShapeDtypeStruct((B, n_pad, f_pad), jnp.float32),
        grid=(B,),
        in_specs=in_specs,
        out_specs=per_graph(f_pad),
        compiler_params=pltpu.CompilerParams(dimension_semantics=("parallel",)),
    )(*inputs)


# ----------------------------- data-pipeline side -----------------------------

def prepare_params(params, f_pad):
    """Pad + cast layer parameters ONCE (not per forward call)."""
    ws_p, wn_p, b_p = [], [], []
    for (w_self, w_neigh, bias) in params:
        f_in, f_out = w_self.shape
        ws_p.append(jnp.pad(w_self.astype(jnp.bfloat16),
                            ((0, f_pad - f_in), (0, f_pad - f_out))))
        wn_p.append(jnp.pad(w_neigh.astype(jnp.bfloat16),
                            ((0, f_pad - f_in), (0, f_pad - f_out))))
        b_p.append(jnp.pad(bias.astype(jnp.float32),
                           (0, f_pad - bias.shape[0])).reshape(1, f_pad))
    return ws_p, wn_p, b_p


def prepare_batch(xs, blocks_per_graph, n_pad, f_pad):
    """Pad + cast a batch of sampled mini-batches.

    Cast to bf16 BEFORE padding and use a single jnp.pad per array -> no extra
    O(N_pad^2) f32 pass per adjacency. Padded regions are explicitly zero
    (required invariant, see kernel docstring).
    """
    n_layers = len(blocks_per_graph[0])
    x_p = jnp.stack([
        jnp.pad(x.astype(jnp.bfloat16),
                ((0, n_pad - x.shape[0]), (0, f_pad - x.shape[1])))
        for x in xs])
    a_p = []
    for l in range(n_layers):
        a_p.append(jnp.stack([
            jnp.pad(blocks[l].astype(jnp.bfloat16),
                    ((0, n_pad - blocks[l].shape[0]),
                     (0, n_pad - blocks[l].shape[1])))
            for blocks in blocks_per_graph]))
    return x_p, a_p


# --------------------------------- reference ----------------------------------

def sage_reference(blocks_a, x, params):
    """Pure-JAX f32 reference (one graph) for tolerance checking."""
    h = x
    n_layers = len(params)
    for l, (a, (w_self, w_neigh, bias)) in enumerate(zip(blocks_a, params)):
        n_dst = a.shape[0]
        h_neigh = a @ h
        h = h[:n_dst] @ w_self + h_neigh @ w_neigh + bias
        if l != n_layers - 1:
            h = jnp.maximum(h, 0.0)
    return h


def init_params(key, in_size, hid_size, n_layers=4):
    params = []
    f_in = in_size
    for _ in range(n_layers):
        key, k1, k2, k3 = jax.random.split(key, 4)
        w_self = jax.random.normal(k1, (f_in, hid_size), jnp.float32) * 0.1
        w_neigh = jax.random.normal(k2, (f_in, hid_size), jnp.float32) * 0.1
        bias = jax.random.normal(k3, (hid_size,), jnp.float32) * 0.01
        params.append((w_self, w_neigh, bias))
        f_in = hid_size
    return params


def make_block(key, n_dst, n_src):
    """Dense mean-normalized, edge-weighted adjacency for one sampled block.

    A[d, s] = edge_weight[d, s] * mask[d, s] / max(in_degree(d), 1)
    matching DGL SAGEConv('mean') with per-edge weights (`pos`).
    """
    k_mask, k_w = jax.random.split(key)
    mask = (jax.random.uniform(k_mask, (n_dst, n_src)) < 0.3).astype(jnp.float32)
    edge_w = jax.random.uniform(k_w, (n_dst, n_src), minval=0.5, maxval=1.5)
    deg = jnp.maximum(mask.sum(axis=1, keepdims=True), 1.0)
    return (mask * edge_w) / deg


if __name__ == "__main__":
    in_size, hid_size = 16, 32
    n_layers = 4
    node_counts = [40, 32, 24, 16, 8]  # N_src per layer, then final N_dst
    batch_size = 4                      # sampled mini-batches fused per pallas_call

    key = jax.random.PRNGKey(0)
    key, k_p = jax.random.split(key)
    params = init_params(k_p, in_size, hid_size, n_layers=n_layers)

    xs, blocks_per_graph = [], []
    for _ in range(batch_size):
        key, k_x = jax.random.split(key)
        xs.append(jax.random.normal(k_x, (node_counts[0], in_size), jnp.float32))
        blocks = []
        for l in range(n_layers):
            key, kb = jax.random.split(key)
            blocks.append(make_block(kb, node_counts[l + 1], node_counts[l]))
        blocks_per_graph.append(blocks)

    # feature/lane dim -> 128; node/sublane dim -> multiple of 16 (bf16 sublanes)
    f_pad = _round_up(max(in_size, hid_size), 128)
    n_pad = _round_up(max(node_counts), 16)

    ws_p, wn_p, b_p = prepare_params(params, f_pad)
    x_p, a_p = prepare_batch(xs, blocks_per_graph, n_pad, f_pad)

    out_pad = sage_forward_padded(x_p, a_p, ws_p, wn_p, b_p)
    out_pad = jax.block_until_ready(out_pad)

    n_out, f_out = node_counts[-1], hid_size
    out = out_pad[:, :n_out, :f_out]

    assert out.shape == (batch_size, n_out, f_out)
    assert bool(jnp.all(jnp.isfinite(out)))

    max_err = 0.0
    for b in range(batch_size):
        ref = sage_reference(blocks_per_graph[b], xs[b], params)
        max_err = max(max_err, float(jnp.max(jnp.abs(out[b] - ref))))
    assert max_err < 2e-2, f"max abs err vs f32 reference: {max_err}"
    print("KERNEL_OK")
</pallas_src>

<mosaic_0001>
module attributes {stable_mosaic.version = 11 : i64} {
  func.func @_sage_fused_kernel(%arg0: i32, %arg1: memref<1x48x128xbf16, #tpu.memory_space<vmem>>, %arg2: memref<1x48x48xbf16, #tpu.memory_space<vmem>>, %arg3: memref<1x48x48xbf16, #tpu.memory_space<vmem>>, %arg4: memref<1x48x48xbf16, #tpu.memory_space<vmem>>, %arg5: memref<1x48x48xbf16, #tpu.memory_space<vmem>>, %arg6: memref<128x128xbf16, #tpu.memory_space<vmem>>, %arg7: memref<128x128xbf16, #tpu.memory_space<vmem>>, %arg8: memref<128x128xbf16, #tpu.memory_space<vmem>>, %arg9: memref<128x128xbf16, #tpu.memory_space<vmem>>, %arg10: memref<128x128xbf16, #tpu.memory_space<vmem>>, %arg11: memref<128x128xbf16, #tpu.memory_space<vmem>>, %arg12: memref<128x128xbf16, #tpu.memory_space<vmem>>, %arg13: memref<128x128xbf16, #tpu.memory_space<vmem>>, %arg14: memref<1x128xf32, #tpu.memory_space<vmem>>, %arg15: memref<1x128xf32, #tpu.memory_space<vmem>>, %arg16: memref<1x128xf32, #tpu.memory_space<vmem>>, %arg17: memref<1x128xf32, #tpu.memory_space<vmem>>, %arg18: memref<1x48x128xf32, #tpu.memory_space<vmem>>) attributes {dimension_semantics = [#tpu.dimension_semantics<parallel>], iteration_bounds = array<i64: 4>, scalar_prefetch = 0 : i64, scratch_operands = 0 : i64, tpu.core_type = #tpu.core_type<tc>, window_params = [{transform_indices = @transform_0, window_bounds = array<i64: 1, 48, 128>}, {transform_indices = @transform_1, window_bounds = array<i64: 1, 48, 48>}, {transform_indices = @transform_2, window_bounds = array<i64: 1, 48, 48>}, {transform_indices = @transform_3, window_bounds = array<i64: 1, 48, 48>}, {transform_indices = @transform_4, window_bounds = array<i64: 1, 48, 48>}, {pipeline_mode = #tpu.pipeline_mode<synchronous>, transform_indices = @transform_5, window_bounds = array<i64: 128, 128>}, {pipeline_mode = #tpu.pipeline_mode<synchronous>, transform_indices = @transform_6, window_bounds = array<i64: 128, 128>}, {pipeline_mode = #tpu.pipeline_mode<synchronous>, transform_indices = @transform_7, window_bounds = array<i64: 128, 128>}, {pipeline_mode = #tpu.pipeline_mode<synchronous>, transform_indices = @transform_8, window_bounds = array<i64: 128, 128>}, {pipeline_mode = #tpu.pipeline_mode<synchronous>, transform_indices = @transform_9, window_bounds = array<i64: 128, 128>}, {pipeline_mode = #tpu.pipeline_mode<synchronous>, transform_indices = @transform_10, window_bounds = array<i64: 128, 128>}, {pipeline_mode = #tpu.pipeline_mode<synchronous>, transform_indices = @transform_11, window_bounds = array<i64: 128, 128>}, {pipeline_mode = #tpu.pipeline_mode<synchronous>, transform_indices = @transform_12, window_bounds = array<i64: 128, 128>}, {pipeline_mode = #tpu.pipeline_mode<synchronous>, transform_indices = @transform_13, window_bounds = array<i64: 1, 128>}, {pipeline_mode = #tpu.pipeline_mode<synchronous>, transform_indices = @transform_14, window_bounds = array<i64: 1, 128>}, {pipeline_mode = #tpu.pipeline_mode<synchronous>, transform_indices = @transform_15, window_bounds = array<i64: 1, 128>}, {pipeline_mode = #tpu.pipeline_mode<synchronous>, transform_indices = @transform_16, window_bounds = array<i64: 1, 128>}, {transform_indices = @transform_17, window_bounds = array<i64: 1, 48, 128>}]} {
    %c0 = arith.constant 0 : index
    %c0_0 = arith.constant 0 : index
    %c0_1 = arith.constant 0 : index
    %0 = vector.load %arg1[%c0, %c0_0, %c0_1] : memref<1x48x128xbf16, #tpu.memory_space<vmem>>, vector<1x48x128xbf16>
    %1 = vector.shape_cast %0 : vector<1x48x128xbf16> to vector<48x128xbf16>
    %c0_2 = arith.constant 0 : index
    %c0_3 = arith.constant 0 : index
    %c0_4 = arith.constant 0 : index
    %2 = vector.load %arg2[%c0_2, %c0_3, %c0_4] : memref<1x48x48xbf16, #tpu.memory_space<vmem>>, vector<1x48x48xbf16>
    %3 = vector.shape_cast %2 : vector<1x48x48xbf16> to vector<48x48xbf16>
    %cst = arith.constant dense<0.000000e+00> : vector<48x128xf32>
    %4 = tpu.matmul %3, %1, %cst {dimension_numbers = #tpu.dot_dimension_numbers<[1], [0], [0], [1], [0, 0, 1, 1], [], []>} : vector<48x48xbf16>, vector<48x128xbf16>, vector<48x128xf32> -> vector<48x128xf32>
    %c0_5 = arith.constant 0 : index
    %c0_6 = arith.constant 0 : index
    %5 = vector.load %arg6[%c0_5, %c0_6] : memref<128x128xbf16, #tpu.memory_space<vmem>>, vector<128x128xbf16>
    %cst_7 = arith.constant dense<0.000000e+00> : vector<48x128xf32>
    %6 = tpu.matmul %1, %5, %cst_7 {dimension_numbers = #tpu.dot_dimension_numbers<[1], [0], [0], [1], [0, 0, 1, 1], [], []>} : vector<48x128xbf16>, vector<128x128xbf16>, vector<48x128xf32> -> vector<48x128xf32>
    %7 = arith.truncf %4 : vector<48x128xf32> to vector<48x128xbf16>
    %c0_8 = arith.constant 0 : index
    %c0_9 = arith.constant 0 : index
    %8 = vector.load %arg10[%c0_8, %c0_9] : memref<128x128xbf16, #tpu.memory_space<vmem>>, vector<128x128xbf16>
    %cst_10 = arith.constant dense<0.000000e+00> : vector<48x128xf32>
    %9 = tpu.matmul %7, %8, %cst_10 {dimension_numbers = #tpu.dot_dimension_numbers<[1], [0], [0], [1], [0, 0, 1, 1], [], []>} : vector<48x128xbf16>, vector<128x128xbf16>, vector<48x128xf32> -> vector<48x128xf32>
    %10 = arith.addf %6, %9 : vector<48x128xf32>
    %c0_11 = arith.constant 0 : index
    %c0_12 = arith.constant 0 : index
    %11 = vector.load %arg14[%c0_11, %c0_12] : memref<1x128xf32, #tpu.memory_space<vmem>>, vector<1x128xf32>
    %12 = vector.broadcast %11 : vector<1x128xf32> to vector<48x128xf32>
    %13 = arith.addf %10, %12 : vector<48x128xf32>
    %cst_13 = arith.constant 0.000000e+00 : f32
    %14 = vector.broadcast %cst_13 : f32 to vector<48x128xf32>
    %15 = arith.maximumf %13, %14 : vector<48x128xf32>
    %16 = arith.truncf %15 : vector<48x128xf32> to vector<48x128xbf16>
    %c0_14 = arith.constant 0 : index
    %c0_15 = arith.constant 0 : index
    %c0_16 = arith.constant 0 : index
    %17 = vector.load %arg3[%c0_14, %c0_15, %c0_16] : memref<1x48x48xbf16, #tpu.memory_space<vmem>>, vector<1x48x48xbf16>
    %18 = vector.shape_cast %17 : vector<1x48x48xbf16> to vector<48x48xbf16>
    %cst_17 = arith.constant dense<0.000000e+00> : vector<48x128xf32>
    %19 = tpu.matmul %18, %16, %cst_17 {dimension_numbers = #tpu.dot_dimension_numbers<[1], [0], [0], [1], [0, 0, 1, 1], [], []>} : vector<48x48xbf16>, vector<48x128xbf16>, vector<48x128xf32> -> vector<48x128xf32>
    %c0_18 = arith.constant 0 : index
    %c0_19 = arith.constant 0 : index
    %20 = vector.load %arg7[%c0_18, %c0_19] : memref<128x128xbf16, #tpu.memory_space<vmem>>, vector<128x128xbf16>
    %cst_20 = arith.constant dense<0.000000e+00> : vector<48x128xf32>
    %21 = tpu.matmul %16, %20, %cst_20 {dimension_numbers = #tpu.dot_dimension_numbers<[1], [0], [0], [1], [0, 0, 1, 1], [], []>} : vector<48x128xbf16>, vector<128x128xbf16>, vector<48x128xf32> -> vector<48x128xf32>
    %22 = arith.truncf %19 : vector<48x128xf32> to vector<48x128xbf16>
    %c0_21 = arith.constant 0 : index
    %c0_22 = arith.constant 0 : index
    %23 = vector.load %arg11[%c0_21, %c0_22] : memref<128x128xbf16, #tpu.memory_space<vmem>>, vector<128x128xbf16>
    %cst_23 = arith.constant dense<0.000000e+00> : vector<48x128xf32>
    %24 = tpu.matmul %22, %23, %cst_23 {dimension_numbers = #tpu.dot_dimension_numbers<[1], [0], [0], [1], [0, 0, 1, 1], [], []>} : vector<48x128xbf16>, vector<128x128xbf16>, vector<48x128xf32> -> vector<48x128xf32>
    %25 = arith.addf %21, %24 : vector<48x128xf32>
    %c0_24 = arith.constant 0 : index
    %c0_25 = arith.constant 0 : index
    %26 = vector.load %arg15[%c0_24, %c0_25] : memref<1x128xf32, #tpu.memory_space<vmem>>, vector<1x128xf32>
    %27 = vector.broadcast %26 : vector<1x128xf32> to vector<48x128xf32>
    %28 = arith.addf %25, %27 : vector<48x128xf32>
    %cst_26 = arith.constant 0.000000e+00 : f32
    %29 = vector.broadcast %cst_26 : f32 to vector<48x128xf32>
    %30 = arith.maximumf %28, %29 : vector<48x128xf32>
    %31 = arith.truncf %30 : vector<48x128xf32> to vector<48x128xbf16>
    %c0_27 = arith.constant 0 : index
    %c0_28 = arith.constant 0 : index
    %c0_29 = arith.constant 0 : index
    %32 = vector.load %arg4[%c0_27, %c0_28, %c0_29] : memref<1x48x48xbf16, #tpu.memory_space<vmem>>, vector<1x48x48xbf16>
    %33 = vector.shape_cast %32 : vector<1x48x48xbf16> to vector<48x48xbf16>
    %cst_30 = arith.constant dense<0.000000e+00> : vector<48x128xf32>
    %34 = tpu.matmul %33, %31, %cst_30 {dimension_numbers = #tpu.dot_dimension_numbers<[1], [0], [0], [1], [0, 0, 1, 1], [], []>} : vector<48x48xbf16>, vector<48x128xbf16>, vector<48x128xf32> -> vector<48x128xf32>
    %c0_31 = arith.constant 0 : index
    %c0_32 = arith.constant 0 : index
    %35 = vector.load %arg8[%c0_31, %c0_32] : memref<128x128xbf16, #tpu.memory_space<vmem>>, vector<128x128xbf16>
    %cst_33 = arith.constant dense<0.000000e+00> : vector<48x128xf32>
    %36 = tpu.matmul %31, %35, %cst_33 {dimension_numbers = #tpu.dot_dimension_numbers<[1], [0], [0], [1], [0, 0, 1, 1], [], []>} : vector<48x128xbf16>, vector<128x128xbf16>, vector<48x128xf32> -> vector<48x128xf32>
    %37 = arith.truncf %34 : vector<48x128xf32> to vector<48x128xbf16>
    %c0_34 = arith.constant 0 : index
    %c0_35 = arith.constant 0 : index
    %38 = vector.load %arg12[%c0_34, %c0_35] : memref<128x128xbf16, #tpu.memory_space<vmem>>, vector<128x128xbf16>
    %cst_36 = arith.constant dense<0.000000e+00> : vector<48x128xf32>
    %39 = tpu.matmul %37, %38, %cst_36 {dimension_numbers = #tpu.dot_dimension_numbers<[1], [0], [0], [1], [0, 0, 1, 1], [], []>} : vector<48x128xbf16>, vector<128x128xbf16>, vector<48x128xf32> -> vector<48x128xf32>
    %40 = arith.addf %36, %39 : vector<48x128xf32>
    %c0_37 = arith.constant 0 : index
    %c0_38 = arith.constant 0 : index
    %41 = vector.load %arg16[%c0_37, %c0_38] : memref<1x128xf32, #tpu.memory_space<vmem>>, vector<1x128xf32>
    %42 = vector.broadcast %41 : vector<1x128xf32> to vector<48x128xf32>
    %43 = arith.addf %40, %42 : vector<48x128xf32>
    %cst_39 = arith.constant 0.000000e+00 : f32
    %44 = vector.broadcast %cst_39 : f32 to vector<48x128xf32>
    %45 = arith.maximumf %43, %44 : vector<48x128xf32>
    %46 = arith.truncf %45 : vector<48x128xf32> to vector<48x128xbf16>
    %c0_40 = arith.constant 0 : index
    %c0_41 = arith.constant 0 : index
    %c0_42 = arith.constant 0 : index
    %47 = vector.load %arg5[%c0_40, %c0_41, %c0_42] : memref<1x48x48xbf16, #tpu.memory_space<vmem>>, vector<1x48x48xbf16>
    %48 = vector.shape_cast %47 : vector<1x48x48xbf16> to vector<48x48xbf16>
    %cst_43 = arith.constant dense<0.000000e+00> : vector<48x128xf32>
    %49 = tpu.matmul %48, %46, %cst_43 {dimension_numbers = #tpu.dot_dimension_numbers<[1], [0], [0], [1], [0, 0, 1, 1], [], []>} : vector<48x48xbf16>, vector<48x128xbf16>, vector<48x128xf32> -> vector<48x128xf32>
    %c0_44 = arith.constant 0 : index
    %c0_45 = arith.constant 0 : index
    %50 = vector.load %arg9[%c0_44, %c0_45] : memref<128x128xbf16, #tpu.memory_space<vmem>>, vector<128x128xbf16>
    %cst_46 = arith.constant dense<0.000000e+00> : vector<48x128xf32>
    %51 = tpu.matmul %46, %50, %cst_46 {dimension_numbers = #tpu.dot_dimension_numbers<[1], [0], [0], [1], [0, 0, 1, 1], [], []>} : vector<48x128xbf16>, vector<128x128xbf16>, vector<48x128xf32> -> vector<48x128xf32>
    %52 = arith.truncf %49 : vector<48x128xf32> to vector<48x128xbf16>
    %c0_47 = arith.constant 0 : index
    %c0_48 = arith.constant 0 : index
    %53 = vector.load %arg13[%c0_47, %c0_48] : memref<128x128xbf16, #tpu.memory_space<vmem>>, vector<128x128xbf16>
    %cst_49 = arith.constant dense<0.000000e+00> : vector<48x128xf32>
    %54 = tpu.matmul %52, %53, %cst_49 {dimension_numbers = #tpu.dot_dimension_numbers<[1], [0], [0], [1], [0, 0, 1, 1], [], []>} : vector<48x128xbf16>, vector<128x128xbf16>, vector<48x128xf32> -> vector<48x128xf32>
    %55 = arith.addf %51, %54 : vector<48x128xf32>
    %c0_50 = arith.constant 0 : index
    %c0_51 = arith.constant 0 : index
    %56 = vector.load %arg17[%c0_50, %c0_51] : memref<1x128xf32, #tpu.memory_space<vmem>>, vector<1x128xf32>
    %57 = vector.broadcast %56 : vector<1x128xf32> to vector<48x128xf32>
    %58 = arith.addf %55, %57 : vector<48x128xf32>
    %c0_52 = arith.constant 0 : index
    %c0_53 = arith.constant 0 : index
    %c0_54 = arith.constant 0 : index
    %59 = vector.load %arg18[%c0_52, %c0_53, %c0_54] : memref<1x48x128xf32, #tpu.memory_space<vmem>>, vector<1x48x128xf32>
    %60 = vector.shape_cast %59 : vector<1x48x128xf32> to vector<48x128xf32>
    %61 = vector.shape_cast %58 : vector<48x128xf32> to vector<1x48x128xf32>
    tpu.vector_store %arg18[%c0_52, %c0_53, %c0_54], %61 {strides = array<i32>} : memref<1x48x128xf32, #tpu.memory_space<vmem>>, vector<1x48x128xf32>,
    return
  }
  func.func @transform_0(%arg0: i32) -> (i32, i32, i32) {
    %c0_i32 = arith.constant 0 : i32
    %c0_i32_0 = arith.constant 0 : i32
    %c0_i32_1 = arith.constant 0 : i32
    return %arg0, %c0_i32, %c0_i32_0 : i32, i32, i32
  }
  func.func @transform_1(%arg0: i32) -> (i32, i32, i32) {
    %c0_i32 = arith.constant 0 : i32
    %c0_i32_0 = arith.constant 0 : i32
    %c0_i32_1 = arith.constant 0 : i32
    return %arg0, %c0_i32, %c0_i32_0 : i32, i32, i32
  }
  func.func @transform_2(%arg0: i32) -> (i32, i32, i32) {
    %c0_i32 = arith.constant 0 : i32
    %c0_i32_0 = arith.constant 0 : i32
    %c0_i32_1 = arith.constant 0 : i32
    return %arg0, %c0_i32, %c0_i32_0 : i32, i32, i32
  }
  func.func @transform_3(%arg0: i32) -> (i32, i32, i32) {
    %c0_i32 = arith.constant 0 : i32
    %c0_i32_0 = arith.constant 0 : i32
    %c0_i32_1 = arith.constant 0 : i32
    return %arg0, %c0_i32, %c0_i32_0 : i32, i32, i32
  }
  func.func @transform_4(%arg0: i32) -> (i32, i32, i32) {
    %c0_i32 = arith.constant 0 : i32
    %c0_i32_0 = arith.constant 0 : i32
    %c0_i32_1 = arith.constant 0 : i32
    return %arg0, %c0_i32, %c0_i32_0 : i32, i32, i32
  }
  func.func @transform_5(%arg0: i32) -> (i32, i32) {
    %c0_i32 = arith.constant 0 : i32
    %c0_i32_0 = arith.constant 0 : i32
    %c0_i32_1 = arith.constant 0 : i32
    return %c0_i32, %c0_i32_0 : i32, i32
  }
  func.func @transform_6(%arg0: i32) -> (i32, i32) {
    %c0_i32 = arith.constant 0 : i32
    %c0_i32_0 = arith.constant 0 : i32
    %c0_i32_1 = arith.constant 0 : i32
    return %c0_i32, %c0_i32_0 : i32, i32
  }
  func.func @transform_7(%arg0: i32) -> (i32, i32) {
    %c0_i32 = arith.constant 0 : i32
    %c0_i32_0 = arith.constant 0 : i32
    %c0_i32_1 = arith.constant 0 : i32
    return %c0_i32, %c0_i32_0 : i32, i32
  }
  func.func @transform_8(%arg0: i32) -> (i32, i32) {
    %c0_i32 = arith.constant 0 : i32
    %c0_i32_0 = arith.constant 0 : i32
    %c0_i32_1 = arith.constant 0 : i32
    return %c0_i32, %c0_i32_0 : i32, i32
  }
  func.func @transform_9(%arg0: i32) -> (i32, i32) {
    %c0_i32 = arith.constant 0 : i32
    %c0_i32_0 = arith.constant 0 : i32
    %c0_i32_1 = arith.constant 0 : i32
    return %c0_i32, %c0_i32_0 : i32, i32
  }
  func.func @transform_10(%arg0: i32) -> (i32, i32) {
    %c0_i32 = arith.constant 0 : i32
    %c0_i32_0 = arith.constant 0 : i32
    %c0_i32_1 = arith.constant 0 : i32
    return %c0_i32, %c0_i32_0 : i32, i32
  }
  func.func @transform_11(%arg0: i32) -> (i32, i32) {
    %c0_i32 = arith.constant 0 : i32
    %c0_i32_0 = arith.constant 0 : i32
    %c0_i32_1 = arith.constant 0 : i32
    return %c0_i32, %c0_i32_0 : i32, i32
  }
  func.func @transform_12(%arg0: i32) -> (i32, i32) {
    %c0_i32 = arith.constant 0 : i32
    %c0_i32_0 = arith.constant 0 : i32
    %c0_i32_1 = arith.constant 0 : i32
    return %c0_i32, %c0_i32_0 : i32, i32
  }
  func.func @transform_13(%arg0: i32) -> (i32, i32) {
    %c0_i32 = arith.constant 0 : i32
    %c0_i32_0 = arith.constant 0 : i32
    %c0_i32_1 = arith.constant 0 : i32
    return %c0_i32, %c0_i32_0 : i32, i32
  }
  func.func @transform_14(%arg0: i32) -> (i32, i32) {
    %c0_i32 = arith.constant 0 : i32
    %c0_i32_0 = arith.constant 0 : i32
    %c0_i32_1 = arith.constant 0 : i32
    return %c0_i32, %c0_i32_0 : i32, i32
  }
  func.func @transform_15(%arg0: i32) -> (i32, i32) {
    %c0_i32 = arith.constant 0 : i32
    %c0_i32_0 = arith.constant 0 : i32
    %c0_i32_1 = arith.constant 0 : i32
    return %c0_i32, %c0_i32_0 : i32, i32
  }
  func.func @transform_16(%arg0: i32) -> (i32, i32) {
    %c0_i32 = arith.constant 0 : i32
    %c0_i32_0 = arith.constant 0 : i32
    %c0_i32_1 = arith.constant 0 : i32
    return %c0_i32, %c0_i32_0 : i32, i32
  }
  func.func @transform_17(%arg0: i32) -> (i32, i32, i32) {
    %c0_i32 = arith.constant 0 : i32
    %c0_i32_0 = arith.constant 0 : i32
    %c0_i32_1 = arith.constant 0 : i32
    return %arg0, %c0_i32, %c0_i32_0 : i32, i32, i32
  }
}

</mosaic_0001>

<bundles_post_ra>
// kernel: sage_forward_padded.1
= control target key start
LH: loop header
LB: loop body
LE: loop exit
PB: predicated region body
PF: predicated region fallthrough
CT: control target
= control target key end

     0   :  { %s3706_s0 = inlined_call_operand.hbm [shape: bf16[4,48,128], index: 0, kind: input, shape index: {}]   ;;  %s3707_s1 = inlined_call_operand.hbm [shape: bf16[4,48,48], index: 1, kind: input, shape index: {}]   ;;  %s3708_s2 = inlined_call_operand.hbm [shape: bf16[4,48,48], index: 2, kind: input, shape index: {}]   ;;  %s3709_s3 = inlined_call_operand.hbm [shape: bf16[4,48,48], index: 3, kind: input, shape index: {}]   ;;  %s3710_s4 = inlined_call_operand.hbm [shape: bf16[4,48,48], index: 4, kind: input, shape index: {}]   ;;  %s3711_s5 = inlined_call_operand.hbm [shape: bf16[128,128], index: 5, kind: input, shape index: {}]   ;;  %s3712_s6 = inlined_call_operand.hbm [shape: bf16[128,128], index: 6, kind: input, shape index: {}]   ;;  %s3713_s7 = inlined_call_operand.hbm [shape: bf16[128,128], index: 7, kind: input, shape index: {}]   ;;  %s3714_s8 = inlined_call_operand.hbm [shape: bf16[128,128], index: 8, kind: input, shape index: {}]   ;;  %s3715_s9 = inlined_call_operand.hbm [shape: bf16[128,128], index: 9, kind: input, shape index: {}]   ;;  %s3716_s10 = inlined_call_operand.hbm [shape: bf16[128,128], index: 10, kind: input, shape index: {}]   ;;  %s3717_s11 = inlined_call_operand.hbm [shape: bf16[128,128], index: 11, kind: input, shape index: {}]   ;;  %s3718_s12 = inlined_call_operand.hbm [shape: bf16[128,128], index: 12, kind: input, shape index: {}]   ;;  %s3719_s13 = inlined_call_operand.vmem [shape: f32[1,128], index: 13, kind: input, shape index: {}]   ;;  %s3720_s14 = inlined_call_operand.vmem [shape: f32[1,128], index: 14, kind: input, shape index: {}]   ;;  %s3721_s15 = inlined_call_operand.vmem [shape: f32[1,128], index: 15, kind: input, shape index: {}]   ;;  %s3722_s16 = inlined_call_operand.vmem [shape: f32[1,128], index: 16, kind: input, shape index: {}]   ;;  %s3723_s17 = inlined_call_operand.hbm [shape: f32[4,48,128], index: 17, kind: output, shape index: {}]  }
   0x1   :  { %3747 = sst [smem:[#allocation42_spill]] %s3706_s0 }
   0x2   :  { %3748 = sst [smem:[#allocation43_spill]] %s3707_s1 }
   0x3   :  { %3749 = sst [smem:[#allocation44_spill]] %s3711_s5 }
   0x4   :  { %3750 = sst [smem:[#allocation45_spill]] %s3713_s7 }
   0x5   :  { %3751 = sst [smem:[#allocation46_spill]] %s3715_s9 }
   0x6   :  { %3752 = sst [smem:[#allocation47_spill]] %s3717_s11 }
   0x7   :  { %3753 = sst [smem:[#allocation48_spill]] %s3719_s13 }
   0x8   :  { %3754 = sst [smem:[#allocation49_spill]] %s3720_s14 }
   0x9   :  { %3755 = sst [smem:[#allocation50_spill]] %s3721_s15 }
   0xa   :  { %3756 = sst [smem:[#allocation51_spill]] %s3722_s16 }
   0xb   :  { %3757 = sst [smem:[#allocation52_spill]] %s3723_s17 }
   0xc   :  { %22 = vsyncpa [#allocation3], 0 }
   0xd   :  { %24 = vsyncpa [#allocation3 + $0x1], 0 }
   0xe   :  { %25 = vsyncpa [#allocation6], 0 }
   0xf   :  { %27 = vsyncpa [#allocation6 + $0x1], 0 }
  0x10   :  { %28 = vsyncpa [#allocation9], 0 }
  0x11   :  { %30 = vsyncpa [#allocation9 + $0x1], 0 }
  0x12   :  { %31 = vsyncpa [#allocation12], 0 }
  0x13   :  { %32 = vsyncpa [#allocation15], 0 }
  0x14   :  { %33 = vsyncpa [#allocation18], 0 }
  0x15   :  { %34 = vsyncpa [#allocation21], 0 }
  0x16   :  { %35 = vsyncpa [#allocation4], 0 }
  0x17   :  { %37 = vsyncpa [#allocation4 + $0x1], 0  ;;  %s3332_s24 = smov 0   ;;  %s3334_s25 = smov 0  }
  0x18   :  { %s3336_s26 = smov 0   ;;  %s3338_s27 = smov 0  }
  0x19 LB: > { %3758 = sst [smem:[#allocation32_spill]] %s3216_s24  ;;  %s3356_s30 = sadd.s32 4294967295, %s3228_s27   ;;  %s3228_s27 = sphi %s3338_s27, %s3805_s27   ;;  %s3224_s26 = sphi %s3336_s26, %s3809_s26   ;;  %s3220_s25 = sphi %s3334_s25, %s3808_s25   ;;  %s3216_s24 = sphi %s3332_s24, %s3806_s24  }
  0x1a   : > { %3759 = sst [smem:[#allocation33_spill]] %s3220_s25  ;;  %p2146_p0 = scmp.ge.s32.totalorder %s3228_s27, 1 }
  0x1b   : > { %3760 = sst [smem:[#allocation34_spill]] %s3228_s27  ;;  %p3739_p1 = scmp.eq.s32.totalorder %s3356_s30, 0 }
  0x1c   : > { %s3761_s5 = sld [smem:[#allocation44_spill]]  ;;  %p456_p2 = scmp.lt.s32.totalorder %s3228_s27, 5 }
  0x1d   : > { %3762 = sst [smem:[#allocation35_spill]] %s3356_s30  ;;  %s3230_s19 = smov [#allocation11]  }
  0x1e   : > { %p3361_p3 = pnand %p2146_p0, %p456_p2  ;;  %s469_s1 = sshll.u32 %s3230_s19, 4  ;;  %s470_s1 = int_to_ptr.vmem [resolvable:$true] %s469_s1 }
  0x1f   : > { %s3765_s7 = sld [smem:[#allocation45_spill]]  ;;  %s3727_s16 = smov 64  }
  0x20   : > { %s3763_s18 = scalar_select %p3361_p3, 1, 0 }
  0x21   : > { %p2637_p4 = pneg %p3361_p3  ;;  %s3767_s9 = sld [smem:[#allocation46_spill]] }
  0x22   : > { %s467_s0 = sshll.u32 %s3761_s5, 4  ;;  %3764 = sst [smem:[#allocation36_spill]] %s3763_s18  ;;  %s468_s0 = int_to_ptr.hbm [resolvable:$true] %s467_s0 }
  0x23   : > { %p3372_p5 = pnand %p2637_p4, %p3739_p1  ;;  %s3231_s5 = smov [#allocation14]  }
  0x24   : > { %s497_s17 = sshll.u32 %s3231_s5, 4  ;;  %s3729_s20 = smov 4   ;;  %s498_s17 = int_to_ptr.vmem [resolvable:$true] %s497_s17 }
  0x25   : > { %s495_s22 = sshll.u32 %s3765_s7, 4  ;;  %s3768_s11 = sld [smem:[#allocation47_spill]]  ;;  %s496_s22 = int_to_ptr.hbm [resolvable:$true] %s495_s22 }
  0x26   : > { %2640 = dma.hbm_to_vmem [thread:$0]  (!%p3372_p5), %s468_s0, 1024, %s470_s1, [#allocation12], %s3727_s16, %s3727_s16, %s3729_s20  }
  0x27   : > { %s523_s19 = sshll.u32 %s3767_s9, 4  ;;  %s3234_s29 = smov [#allocation17]   ;;  %s524_s19 = int_to_ptr.hbm [resolvable:$true] %s523_s19 }
  0x28   : > { %2646 = dma.hbm_to_vmem [thread:$0]  (!%p3372_p5), %s496_s22, 1024, %s498_s17, [#allocation15], %s3727_s16, %s3727_s16, %s3729_s20  }
  0x29   : > { %s525_s0 = sshll.u32 %s3234_s29, 4  ;;  %s3235_s17 = smov [#allocation20]   ;;  %s526_s0 = int_to_ptr.vmem [resolvable:$true] %s525_s0 }
  0x2a   : > { %2652 = dma.hbm_to_vmem [thread:$0]  (!%p3372_p5), %s524_s19, 1024, %s526_s0, [#allocation18], %s3727_s16, %s3727_s16, %s3729_s20  }
  0x2b   : > { %s551_s28 = sshll.u32 %s3768_s11, 4  ;;  %s553_s1 = sshll.u32 %s3235_s17, 4  ;;  %s552_s28 = int_to_ptr.hbm [resolvable:$true] %s551_s28  ;;  %s554_s1 = int_to_ptr.vmem [resolvable:$true] %s553_s1 }
  0x2c   : > { %2658 = dma.hbm_to_vmem [thread:$0]  (!%p3372_p5), %s552_s28, 1024, %s554_s1, [#allocation21], %s3727_s16, %s3727_s16, %s3729_s20  }
  0x2d   : > { %s2145_s22 = sadd.s32 4294967294, %s3228_s27   ;;  %s3404_s5 = sadd.s32 1, %s3228_s27  }
  0x2e   : > { %3769 = sst [smem:[#allocation37_spill]] %s3404_s5  ;;  %s47_s21 = ssub.s32 %s3228_s27, %s3404_s5 }
  0x2f   : > { %s50_s29 = sadd.s32 1, %s3224_s26  ;;  %p48_p6 = scmp.eq.s32.totalorder %s47_s21, 0 }
  0x30   : > { %p57_p7 = scmp.ne.s32.totalorder %s3224_s26, %s3220_s25  ;;  %p58_p8 = scmp.eq.s32.totalorder %s3228_s27, 0 }
  0x31   : > { %p63_p9 = scmp.ne.s32.totalorder %s3220_s25, %s3216_s24  ;;  %p443_p12 = scmp.eq.s32.totalorder %s3356_s30, 3 }
  0x32   : > { %s3415_s19 = scalar_select %p48_p6, %s3224_s26, %s50_s29  }
  0x33   : > { %p59_p10 = por %p58_p8, %p57_p7  ;;  %p3419_p11 = por %p3739_p1, %p63_p9 }
  0x34   : > { %3770 = sst [smem:[#allocation38_spill]] %s3415_s19  ;;  %p449_p13 = scmp.eq.s32.totalorder %s2145_s22, 3 }
  0x35   : > { %s3771_s0 = scalar_select %p3419_p11, 1, 0 }
  0x36   : > { %p2690_p0 = scmp.lt.s32.totalorder %s3228_s27, 4  ;;  %s3734_s28 = sand.u32 1, %s3224_s26  }
  0x37   : > { %3772 = sst [smem:[#allocation39_spill]] %s3771_s0  ;;  %p3426_p2 = por %p443_p12, %p57_p7 }
  0x38   : > { %p3430_p4 = por %p449_p13, %p63_p9  ;;  %s3436_s21 = smul.u32 24, %s3734_s28 }
  0x39   : > { %s3773_s17 = scalar_select %p3426_p2, 1, 0 }
  0x3a   : > { %s3775_s1 = scalar_select %p3430_p4, 1, 0 }
  0x3b   : > { %3774 = sst [smem:[#allocation40_spill]] %s3773_s17  ;;  %p3438_p6 = pnand %p2690_p0, %p59_p10 }
  0x3c   : > { %3776 = sst [smem:[#allocation41_spill]] %s3775_s1  ;;  %s3443_s22 = smul.u32 24, %s3228_s27 }
  0x3d   : > { %s615_s16 = sand.u32 1, %s3228_s27   ;;  %s3778_s9 = sld [smem:[#allocation43_spill]] }
  0x3e   : > { %s619_s5 = scalar_lea.vmem [#allocation5], %s3436_s21  ;;  %s3451_s28 = scalar_lea.sflag [#allocation6], %s615_s16 }
  0x3f   : > { %s627_s1 = sshll.u32 %s619_s5, 4  ;;  %p3455_p8 = pneg %p3438_p6  ;;  %s628_s1 = int_to_ptr.vmem [resolvable:$true] %s627_s1 }
  0x43   : > { %s624_s11 = scalar_lea.hbm %s3778_s9, %s3443_s22  ;;  %s2875_s20 = scalar_lea.hbm %s3778_s9, 96 }
  0x44   : > { %s625_s19 = sshll.u32 %s624_s11, 4  ;;  %s626_s19 = int_to_ptr.hbm [resolvable:$true] %s625_s19 }
  0x45   : > { %s2868_s24 = sshra.s32 %s626_s19, 4  ;;  %s2869_s24 = int_to_ptr.hbm [resolvable:$true] %s2868_s24 }
  0x46   : > { %s2870_s17 = scalar_lea.hbm %s2869_s24, 24  ;;  %p2876_p12 = scmp.lt.s32.totalorder %s2869_s24, %s3778_s9 }
  0x47   : > { %p2871_p7 = scmp.ne.s32.totalorder %s2869_s24, %s2870_s17  ;;  %p2877_p13 = scmp.lt.s32.totalorder %s2875_s20, %s2870_s17 }
  0x49   : > { %p2873_p9 = pnand %p3455_p8, %p2871_p7  ;;  %p2878_p0 = por %p2877_p13, %p2876_p12 }
  0x4b   : > { %p2874_p10 = pneg %p2873_p9 }
  0x4d   : > { %p2879_p1 = pnand %p2878_p0, %p2874_p10 }
  0x4f   : > { %2882 = shalt.err (!%p2879_p1)
}
  0x50   : > { %s3780_s14 = smov 4   ;;  %s3781_s13 = smov 64  }
  0x51   : > { %2668 = dma.hbm_to_vmem [thread:$0]  (!%p3438_p6), %s626_s19, 384, %s628_s1, %s3451_s28, %s3781_s13, %s3781_s13, %s3780_s14  }
  0x52   : > { %s668_s30 = scalar_lea.hbm %s3709_s3, %s3443_s22  ;;  %s663_s27 = scalar_lea.vmem [#allocation8], %s3436_s21 }
  0x53   : > { %s671_s24 = sshll.u32 %s663_s27, 4  ;;  %s669_s17 = sshll.u32 %s668_s30, 4  ;;  %s672_s24 = int_to_ptr.vmem [resolvable:$true] %s671_s24  ;;  %s670_s17 = int_to_ptr.hbm [resolvable:$true] %s669_s17 }
  0x54   : > { %s481_s9 = sshll.u32 %s3712_s6, 4  ;;  %s3481_s0 = scalar_lea.sflag [#allocation9], %s615_s16  ;;  %s482_s9 = int_to_ptr.hbm [resolvable:$true] %s481_s9 }
  0x55   : > { %s2898_s25 = sshra.s32 %s670_s17, 4  ;;  %s2905_s7 = scalar_lea.hbm %s3709_s3, 96  ;;  %s2899_s25 = int_to_ptr.hbm [resolvable:$true] %s2898_s25 }
  0x56   : > { %s2900_s18 = scalar_lea.hbm %s2899_s25, 24  ;;  %p2906_p10 = scmp.lt.s32.totalorder %s2899_s25, %s3709_s3 }
  0x57   : > { %p2901_p1 = scmp.ne.s32.totalorder %s2899_s25, %s2900_s18  ;;  %p2907_p12 = scmp.lt.s32.totalorder %s2905_s7, %s2900_s18 }
  0x59   : > { %p2903_p7 = pnand %p2901_p1, %p3455_p8  ;;  %p2908_p13 = por %p2907_p12, %p2906_p10 }
  0x5b   : > { %p2904_p9 = pneg %p2903_p7 }
  0x5d   : > { %p2909_p0 = pnand %p2908_p13, %p2904_p9 }
  0x5f   : > { %2912 = shalt.err (!%p2909_p0)
}
  0x60   : > { %2674 = dma.hbm_to_vmem [thread:$0]  (!%p3438_p6), %s670_s17, 384, %s672_s24, %s3481_s0, %s3781_s13, %s3781_s13, %s3780_s14  }
  0x61   : > { %s3236_s16 = smov [#allocation13]   ;;  %s509_s25 = sshll.u32 %s3714_s8, 4  ;;  %s510_s25 = int_to_ptr.hbm [resolvable:$true] %s509_s25 }
  0x62   : > { %s483_s27 = sshll.u32 %s3236_s16, 4  ;;  %s537_s24 = sshll.u32 %s3716_s10, 4  ;;  %s484_s27 = int_to_ptr.vmem [resolvable:$true] %s483_s27  ;;  %s538_s24 = int_to_ptr.hbm [resolvable:$true] %s537_s24 }
  0x63   : > { %2643 = dma.hbm_to_vmem [thread:$0]  (!%p3372_p5), %s482_s9, 1024, %s484_s27, [#allocation12], %s3781_s13, %s3781_s13, %s3780_s14  }
  0x64   : > { %s3237_s17 = smov [#allocation16]   ;;  %s3238_s7 = smov [#allocation19]  }
  0x65   : > { %s511_s1 = sshll.u32 %s3237_s17, 4  ;;  %s539_s30 = sshll.u32 %s3238_s7, 4  ;;  %s512_s1 = int_to_ptr.vmem [resolvable:$true] %s511_s1  ;;  %s540_s30 = int_to_ptr.vmem [resolvable:$true] %s539_s30 }
  0x66   : > { %2649 = dma.hbm_to_vmem [thread:$0]  (!%p3372_p5), %s510_s25, 1024, %s512_s1, [#allocation15], %s3781_s13, %s3781_s13, %s3780_s14  }
  0x67   : > { %s565_s16 = sshll.u32 %s3718_s12, 4  ;;  %s3239_s27 = smov [#allocation22]   ;;  %s566_s16 = int_to_ptr.hbm [resolvable:$true] %s565_s16 }
  0x68   : > { %2655 = dma.hbm_to_vmem [thread:$0]  (!%p3372_p5), %s538_s24, 1024, %s540_s30, [#allocation18], %s3781_s13, %s3781_s13, %s3780_s14  }
  0x69   : > { %s567_s20 = sshll.u32 %s3239_s27, 4  ;;  %s3782_s18 = sld [smem:[#allocation42_spill]]  ;;  %s568_s20 = int_to_ptr.vmem [resolvable:$true] %s567_s20 }
  0x6a   : > { %2661 = dma.hbm_to_vmem [thread:$0]  (!%p3372_p5), %s566_s16, 1024, %s568_s20, [#allocation21], %s3781_s13, %s3781_s13, %s3780_s14  }
  0x6b   : > { %s597_s1 = scalar_lea.vmem [#allocation2], %s3436_s21  ;;  %s3783_s9 = sand.u32 1, %s3224_s26  }
  0x6c   : > { %s605_s7 = sshll.u32 %s597_s1, 4  ;;  %s594_s24 = scalar_lea.sflag [#allocation3], %s3783_s9  ;;  %s606_s7 = int_to_ptr.vmem [resolvable:$true] %s605_s7 }
  0x6f   : > { %s602_s19 = scalar_lea.hbm %s3782_s18, %s3443_s22  ;;  %s3055_s5 = scalar_lea.hbm %s3782_s18, 96 }
  0x70   : > { %s603_s17 = sshll.u32 %s602_s19, 4  ;;  %s604_s17 = int_to_ptr.hbm [resolvable:$true] %s603_s17 }
  0x71   : > { %s3048_s30 = sshra.s32 %s604_s17, 4  ;;  %s3049_s30 = int_to_ptr.hbm [resolvable:$true] %s3048_s30 }
  0x72   : > { %s3050_s11 = scalar_lea.hbm %s3049_s30, 24  ;;  %p3056_p5 = scmp.lt.s32.totalorder %s3049_s30, %s3782_s18 }
  0x73   : > { %p3051_p1 = scmp.ne.s32.totalorder %s3049_s30, %s3050_s11  ;;  %p3057_p10 = scmp.lt.s32.totalorder %s3055_s5, %s3050_s11 }
  0x75   : > { %p3053_p7 = pnand %p3051_p1, %p3455_p8  ;;  %p3058_p12 = por %p3057_p10, %p3056_p5 }
  0x77   : > { %p3054_p9 = pneg %p3053_p7 }
  0x79   : > { %p3059_p13 = pnand %p3058_p12, %p3054_p9 }
  0x7b   : > { %3062 = shalt.err (!%p3059_p13)
}
  0x7c   : > { %2665 = dma.hbm_to_vmem [thread:$0]  (!%p3438_p6), %s604_s17, 384, %s606_s7, %s594_s24, %s3781_s13, %s3781_s13, %s3780_s14  }
  0x7d   : > { %s646_s1 = scalar_lea.hbm %s3708_s2, %s3443_s22  ;;  %s641_s27 = scalar_lea.vmem [#allocation7], %s3436_s21 }
  0x7e   : > { %s647_s9 = sshll.u32 %s646_s1, 4  ;;  %s649_s30 = sshll.u32 %s641_s27, 4  ;;  %s648_s9 = int_to_ptr.hbm [resolvable:$true] %s647_s9  ;;  %s650_s30 = int_to_ptr.vmem [resolvable:$true] %s649_s30 }
  0x7f   : > { %s3078_s11 = sshra.s32 %s648_s9, 4  ;;  %s3085_s17 = scalar_lea.hbm %s3708_s2, 96  ;;  %s3079_s11 = int_to_ptr.hbm [resolvable:$true] %s3078_s11 }
  0x80   : > { %s3080_s23 = scalar_lea.hbm %s3079_s11, 24  ;;  %p3086_p9 = scmp.lt.s32.totalorder %s3079_s11, %s3708_s2 }
  0x81   : > { %p3081_p0 = scmp.ne.s32.totalorder %s3079_s11, %s3080_s23  ;;  %p3087_p5 = scmp.lt.s32.totalorder %s3085_s17, %s3080_s23 }
  0x83   : > { %p3083_p1 = pnand %p3081_p0, %p3455_p8  ;;  %p3088_p10 = por %p3087_p5, %p3086_p9 }
  0x85   : > { %p3084_p7 = pneg %p3083_p1 }
  0x87   : > { %p3089_p12 = pnand %p3088_p10, %p3084_p7 }
  0x89   : > { %3092 = shalt.err (!%p3089_p12)
}
  0x8a   : > { %2671 = dma.hbm_to_vmem [thread:$0]  (!%p3438_p6), %s648_s9, 384, %s650_s30, %s3451_s28, %s3781_s13, %s3781_s13, %s3780_s14  }
  0x8b   : > { %s690_s19 = scalar_lea.hbm %s3710_s4, %s3443_s22  ;;  %s685_s27 = scalar_lea.vmem [#allocation10], %s3436_s21 }
  0x8c   : > { %s691_s1 = sshll.u32 %s690_s19, 4  ;;  %s693_s11 = sshll.u32 %s685_s27, 4  ;;  %s692_s1 = int_to_ptr.hbm [resolvable:$true] %s691_s1  ;;  %s694_s11 = int_to_ptr.vmem [resolvable:$true] %s693_s11 }
  0x8d   : > { %s3108_s23 = sshra.s32 %s692_s1, 4  ;;  %s3115_s28 = scalar_lea.hbm %s3710_s4, 96  ;;  %s3109_s23 = int_to_ptr.hbm [resolvable:$true] %s3108_s23 }
  0x8e   : > { %s3110_s5 = scalar_lea.hbm %s3109_s23, 24  ;;  %p3116_p7 = scmp.lt.s32.totalorder %s3109_s23, %s3710_s4 }
  0x8f   : > { %p3111_p13 = scmp.ne.s32.totalorder %s3109_s23, %s3110_s5  ;;  %p3117_p9 = scmp.lt.s32.totalorder %s3115_s28, %s3110_s5 }
  0x91   : > { %p3113_p0 = pnand %p3111_p13, %p3455_p8  ;;  %p3118_p5 = por %p3117_p9, %p3116_p7 }
  0x93   : > { %p3114_p1 = pneg %p3113_p0 }
  0x95   : > { %p3119_p10 = pnand %p3118_p5, %p3114_p1 }
  0x97   : > { %3122 = shalt.err (!%p3119_p10)
}
  0x98   : > { %2677 = dma.hbm_to_vmem [thread:$0]  (!%p3438_p6), %s692_s1, 384, %s694_s11, %s3481_s0, %s3781_s13, %s3781_s13, %s3780_s14  }
  0x99   : > { %705 = sbr.rel (%p3361_p3) target bundleno = 1492 (0x5d4), region = 88  ;;  %s3785_s21 = sld [smem:[#allocation33_spill]] (!%p3361_p3) }
  0x9f   : > { %s3587_s7 = sand.u32 1, %s3785_s21  }
  0xa0   : > { %s2590_s24 = smul.u32 24, %s3587_s7  ;;  %s708_s16 = scalar_lea.sflag [#allocation3], %s3587_s7 }
  0xa2   : > { %s711_s20 = scalar_lea.vmem [#allocation2], %s2590_s24 }
  0xa3   : > { %3183 = dma.done.wait (%p3419_p11), %s708_s16, 384  }
  0xa4   : > { %3185 = vsyncadd (%p3419_p11), %s708_s16, 4294966912  ;;  %s3787_s29 = sld [smem:[#allocation35_spill]]  ;;  %s3596_s0 = scalar_lea.vmem [#allocation5], %s2590_s24 }
  0xaa   : > { %s717_s13 = sand.u32 1, %s3787_s29  }
  0xab   : > { %s718_s14 = scalar_lea.sflag [#allocation6], %s717_s13 }
  0xac   : > { %3187 = dma.done.wait (%p3419_p11), %s718_s14, 768  }
  0xad   : > { %3189 = vsyncadd (%p3419_p11), %s718_s14, 4294966528  ;;  %s3602_s19 = scalar_lea.vmem [#allocation7], %s2590_s24  ;;  %s738_s1 = scalar_lea.sflag [#allocation9], %s717_s13 }
  0xae   : > { %s3604_s27 = scalar_lea.vmem [#allocation8], %s2590_s24 }
  0xaf   : > { %3191 = dma.done.wait (%p3419_p11), %s738_s1, 768  }
  0xb0   : > { %3193 = vsyncadd (%p3419_p11), %s738_s1, 4294966528  ;;  %s3610_s11 = scalar_lea.vmem [#allocation10], %s2590_s24  ;;  %p3788_p3 = scmp.eq.s32.totalorder %s3787_s29, 0 }
  0xb2   : > { %3195 = dma.done.wait (%p3788_p3), [#allocation12], 2048   ;;  %p3789_p6 = pmov %p3788_p3 }
  0xb3   : > { %p3790_p8 = pmov %p3788_p3 }
  0xb4   : > { %3197 = vsyncadd (%p3789_p6), [#allocation12], 4294965248 }
  0xb5   : > { %3199 = dma.done.wait (%p3790_p8), [#allocation15], 2048   ;;  %p3791_p12 = pmov %p3788_p3 }
  0xb6   : > { %p3792_p13 = pmov %p3788_p3 }
  0xb7   : > { %3201 = vsyncadd (%p3791_p12), [#allocation15], 4294965248 }
  0xb8   : > { %3203 = dma.done.wait (%p3792_p13), [#allocation18], 2048   ;;  %p3793_p0 = pmov %p3788_p3 }
  0xba   : > { %3205 = vsyncadd (%p3793_p0), [#allocation18], 4294965248  ;;  %p3794_p11 = pmov %p3793_p0 }
  0xbb   : > { %p3795_p1 = pmov %p3793_p0 }
  0xbc   : > { %3207 = dma.done.wait (%p3794_p11), [#allocation21], 2048  }
  0xbd   : > { %3209 = vsyncadd (%p3795_p1), [#allocation21], 4294965248  ;;  %v2503_v0 = vld [vmem:[%s711_s20 + $0x10] sm:$0xff]  ;;  %v2502_v1 = vld [vmem:[%s711_s20 + $0x8] sm:$0xff]  ;;  %vm909_vm0 = vcmask 392192   ;;  %s3796_s25 = sld [smem:[#allocation48_spill]] }
  0xbe   : > { %924 = vmatpush.bf16.msra.mxu0 %v2503_v0  ;;  %v2501_v2 = vld [vmem:[%s711_s20] sm:$0xff]  ;;  %v2504_v3 = vld [vmem:[%s3596_s0] sm:$0xff]  ;;  %v2505_v12 = vld [vmem:[%s3596_s0 + $0x8] sm:$0xff]  ;;  %s3797_s9 = sld [smem:[#allocation49_spill]]  ;;  %s2591_s22 = smul.u32 48, %s3587_s7 }
  0xbf   : > { %v2514_v4 = vld [vmem:[#allocation11 + $0x38] sm:$0xff]  ;;  %v2513_v6 = vld [vmem:[#allocation11 + $0x30] sm:$0xff]  ;;  %v2512_v8 = vld [vmem:[#allocation11 + $0x28] sm:$0xff]  ;;  %s3798_s21 = sld [smem:[#allocation50_spill]]  ;;  %s2592_s14 = smul.u32 48, %s3787_s29 }
  0xc0   : > { %v2522_v5 = vld [vmem:[#allocation17 + $0x38] sm:$0xff]  ;;  %1098 = vmatpush.bf16.msra.mxu2 %v2514_v4  ;;  %v2521_v7 = vld [vmem:[#allocation17 + $0x30] sm:$0xff]  ;;  %v2520_v9 = vld [vmem:[#allocation17 + $0x28] sm:$0xff]  ;;  %s3799_s20 = sld [smem:[#allocation51_spill]]  ;;  %s3665_s13 = scalar_lea.vmem [#allocation23], %s2591_s22 }
  0xc1   : > { %1026 = vmatpush.bf16.msra.mxu1 %v2522_v5  ;;  %v2511_v10 = vld [vmem:[#allocation11 + $0x20] sm:$0xff]  ;;  %v2510_v13 = vld [vmem:[#allocation11 + $0x18] sm:$0xff]  ;;  %v2509_v15 = vld [vmem:[#allocation11 + $0x10] sm:$0xff]  ;;  %s3800_s1 = sld [smem:[#allocation52_spill]]  ;;  %s1907_s23 = sshll.u32 %s3665_s13, 4  ;;  %s1908_s23 = int_to_ptr.vmem [resolvable:$true] %s1907_s23 }
  0xc2   : > { %925 = vmatpush.bf16.msra.mxu0 %v2502_v1  ;;  %v2519_v11 = vld [vmem:[#allocation17 + $0x20] sm:$0xff]  ;;  %v2518_v14 = vld [vmem:[#allocation17 + $0x18] sm:$0xff]  ;;  %v2508_v16 = vld [vmem:[#allocation11 + $0x8] sm:$0xff] }
  0xc3   : > { %v2507_v17 = vld [vmem:[#allocation11] sm:$0xff]  ;;  %v2506_v18 = vld [vmem:[%s3596_s0 + $0x10] sm:$0xff] }
  0xc4   : > { %1099 = vmatpush.bf16.msra.mxu2 %v2513_v6  ;;  %v2517_v19 = vld [vmem:[#allocation17 + $0x10] sm:$0xff]  ;;  %v2516_v20 = vld [vmem:[#allocation17 + $0x8] sm:$0xff]  ;;  %v2515_v21 = vld [vmem:[#allocation17] sm:$0xff] }
  0xc5   : > { %1027 = vmatpush.bf16.msra.mxu1 %v2521_v7  ;;  %v2744_v42 = vld [vmem:[%s3796_s25] ss:$0 sm:$0xff]  ;;  %v2531_v4 = vld [vmem:[#allocation13 + $0x28] sm:$0xff]  ;;  %v2530_v5 = vld [vmem:[#allocation13 + $0x20] sm:$0xff]  ;;  %s1895_s25 = scalar_lea.sflag [#allocation4], %s3587_s7 }
  0xc6   : > { %926 = vmatpush.bf16.msra.mxu0 %v2501_v2  ;;  %v2529_v6 = vld [vmem:[#allocation13 + $0x18] sm:$0xff] }
  0xc7   : > { %v2524_v7 = vld [vmem:[%s3602_s19 + $0x8] sm:$0xff]  ;;  %s3158_s30 = scalar_lea.hbm %s3800_s1, 192 }
  0xc8   : > { %1100 = vmatpush.bf16.msra.mxu2 %v2512_v8  ;;  %v2528_v8 = vld [vmem:[#allocation13 + $0x10] sm:$0xff] }
  0xc9   : > { %2194 = vmatmul.msk.bf16.vlgmr.msra.gmra.mxu0 %vm909_vm0, %v2504_v3  ;;  %1028 = vmatpush.bf16.msra.mxu1 %v2520_v9  ;;  %v2532_v3 = vld [vmem:[#allocation13 + $0x30] sm:$0xff]  ;;  %v2527_v9 = vld [vmem:[#allocation13 + $0x8] sm:$0xff] }
  0xcc   : > { %1101 = vmatpush.bf16.msra.mxu2 %v2511_v10  ;;  %v2526_v10 = vld [vmem:[#allocation13] sm:$0xff] }
  0xcd   : > { %1029 = vmatpush.bf16.msra.mxu1 %v2519_v11  ;;  %v2525_v11 = vld [vmem:[%s3602_s19 + $0x10] sm:$0xff] }
  0xd0   : > { %1102 = vmatpush.bf16.msra.mxu2 %v2510_v13  ;;  %v2540_v13 = vld [vmem:[#allocation19 + $0x30] sm:$0xff] }
  0xd1   : > { %1030 = vmatpush.bf16.msra.mxu1 %v2518_v14  ;;  %v2539_v14 = vld [vmem:[#allocation19 + $0x28] sm:$0xff] }
  0xd4   : > { %1103 = vmatpush.bf16.msra.mxu2 %v2509_v15  ;;  %v2538_v15 = vld [vmem:[#allocation19 + $0x20] sm:$0xff] }
  0xd5   : > { %1031 = vmatpush.bf16.msra.mxu1 %v2517_v19  ;;  %v2534_v19 = vld [vmem:[#allocation19] sm:$0xff] }
  0xd8   : > { %1104 = vmatpush.bf16.msra.mxu2 %v2508_v16  ;;  %v2537_v16 = vld [vmem:[#allocation19 + $0x18] sm:$0xff] }
  0xd9   : > { %2195 = vmatmul.msk.bf16.gmra.mxu0 %vm909_vm0, %v2505_v12  ;;  %1032 = vmatpush.bf16.msra.mxu1 %v2516_v20  ;;  %v2541_v12 = vld [vmem:[#allocation19 + $0x38] sm:$0xff] }
  0xda   : > { %1278 = vmatpush.bf16.msrb.mxu0 %v2541_v12  ;;  %v2558_v12 = vld [vmem:[#allocation20 + $0x28] sm:$0xff] }
  0xdc   : > { %1105 = vmatpush.bf16.msra.mxu2 %v2507_v17  ;;  %v2536_v17 = vld [vmem:[#allocation19 + $0x10] sm:$0xff] }
  0xdd   : > { %1033 = vmatpush.bf16.msra.mxu1 %v2515_v21 }
  0xde   : > { %1279 = vmatpush.bf16.msrb.mxu0 %v2540_v13  ;;  %v2557_v13 = vld [vmem:[#allocation20 + $0x20] sm:$0xff] }
  0xdf   : > { %1106 = vmatmul.bf16.vlgmr.msra.gmra.mxu2 %v2501_v2  ;;  %v2523_v2 = vld [vmem:[%s3602_s19] sm:$0xff] }
  0xe2   : > { %1280 = vmatpush.bf16.msrb.mxu0 %v2539_v14  ;;  %v2556_v14 = vld [vmem:[#allocation20 + $0x18] sm:$0xff] }
  0xe6   : > { %1281 = vmatpush.bf16.msrb.mxu0 %v2538_v15  ;;  %v2555_v15 = vld [vmem:[#allocation20 + $0x10] sm:$0xff] }
  0xe9   : > { %2196 = vmatmul.msk.bf16.gmra.mxu0 %vm909_vm0, %v2506_v18  ;;  %v2535_v18 = vld [vmem:[#allocation19 + $0x8] sm:$0xff] }
  0xea   : > { %1282 = vmatpush.bf16.msrb.mxu0 %v2537_v16  ;;  %v2554_v16 = vld [vmem:[#allocation20 + $0x8] sm:$0xff] }
  0xee   : > { %1283 = vmatpush.bf16.msrb.mxu0 %v2536_v17  ;;  %v2553_v17 = vld [vmem:[#allocation20] sm:$0xff] }
  0xef   : > { %1111 = vmatmul.bf16.gmra.mxu2 %v2502_v1 }
  0xf2   : > { %1284 = vmatpush.bf16.msrb.mxu0 %v2535_v18 }
  0xf6   : > { %1285 = vmatpush.bf16.msrb.mxu0 %v2534_v19 }
  0xff   : > { %1116 = vmatmul.bf16.gmra.mxu2 %v2503_v0  ;;  %v2533_v0 = vld [vmem:[#allocation13 + $0x38] sm:$0xff] }
 0x146   : > { %v928_v22 = vpop.f32.mrf.mxu0 }
 0x14e   : > { %v930_v23 = vpop.f32.mrf.mxu0 }
 0x14f   : > { %v959_v24 = vpack.c.bf16 %v930_v23, %v928_v22 }
 0x151   : > { %1034 = vmatmul.bf16.vlgmr.msra.gmra.mxu1 %v959_v24 }
 0x156   : > { %v933_v25 = vpop.f32.mrf.mxu0 }
 0x15e   : > { %v935_v26 = vpop.f32.mrf.mxu0 }
 0x15f   : > { %v960_v27 = vpack.c.bf16 %v935_v26, %v933_v25 }
 0x161   : > { %1039 = vmatmul.bf16.gmra.mxu1 %v960_v27 }
 0x162   : > { %v1107_v31 = vpop.f32.mrf.mxu2 }
 0x166   : > { %v938_v28 = vpop.f32.mrf.mxu0 }
 0x16a   : > { %v1109_v33 = vpop.f32.mrf.mxu2 }
 0x16e   : > { %v940_v29 = vpop.f32.mrf.mxu0 }
 0x16f   : > { %v961_v30 = vpack.c.bf16 %v940_v29, %v938_v28  ;;  %v2552_v29 = vld [vmem:[#allocation14 + $0x38] sm:$0xff] }
 0x170   : > { %1602 = vmatpush.bf16.msra.mxu0 %v2552_v29 }
 0x171   : > { %1044 = vmatmul.bf16.gmra.mxu1 %v961_v30  ;;  %v2551_v30 = vld [vmem:[#allocation14 + $0x30] sm:$0xff] }
 0x172   : > { %v1112_v35 = vpop.f32.mrf.mxu2 }
 0x174   : > { %1603 = vmatpush.bf16.msra.mxu0 %v2551_v30 }
 0x17a   : > { %v1114_v37 = vpop.f32.mrf.mxu2 }
 0x182   : > { %v1117_v39 = vpop.f32.mrf.mxu2 }
 0x18a   : > { %v1119_v44 = vpop.f32.mrf.mxu2 }
 0x1ce   : > { %v1035_v32 = vpop.f32.mrf.mxu1 }
 0x1cf   : > { %v1108_v52 = vadd.f32 %v1107_v31, %v1035_v32  ;;  %v2550_v31 = vld [vmem:[#allocation14 + $0x28] sm:$0xff]  ;;  %v2549_v32 = vld [vmem:[#allocation14 + $0x20] sm:$0xff] }
 0x1d0   : > { %1604 = vmatpush.bf16.msra.mxu0 %v2550_v31  ;;  %v2567_v31 = vld [vmem:[#allocation16 + $0x18] sm:$0xff] }
 0x1d1   : > { %v1126_v59 = vadd.f32 %v2744_v42, %v1108_v52 }
 0x1d3   : > { %v1132_v63 = vmax.f32 %v1126_v59, 0.0 }
 0x1d4   : > { %1605 = vmatpush.bf16.msra.mxu0 %v2549_v32  ;;  %v2566_v32 = vld [vmem:[#allocation16 + $0x10] sm:$0xff] }
 0x1d6   : > { %v1037_v34 = vpop.f32.mrf.mxu1 }
 0x1d7   : > { %v1110_v49 = vadd.f32 %v1109_v33, %v1037_v34  ;;  %v2548_v33 = vld [vmem:[#allocation14 + $0x18] sm:$0xff]  ;;  %v2547_v34 = vld [vmem:[#allocation14 + $0x10] sm:$0xff] }
 0x1d8   : > { %1606 = vmatpush.bf16.msra.mxu0 %v2548_v33  ;;  %v2565_v33 = vld [vmem:[#allocation16 + $0x8] sm:$0xff] }
 0x1d9   : > { %v1127_v56 = vadd.f32 %v2744_v42, %v1110_v49 }
 0x1db   : > { %v1133_v61 = vmax.f32 %v1127_v56, 0.0 }
 0x1dc   : > { %1607 = vmatpush.bf16.msra.mxu0 %v2547_v34  ;;  %v2564_v34 = vld [vmem:[#allocation16] sm:$0xff] }
 0x1dd   : > { %v1138_v1 = vpack.c.bf16 %v1133_v61, %v1132_v63 }
 0x1de   : > { %v1040_v36 = vpop.f32.mrf.mxu1 }
 0x1df   : > { %v1113_v46 = vadd.f32 %v1112_v35, %v1040_v36  ;;  %v2546_v35 = vld [vmem:[#allocation14 + $0x8] sm:$0xff]  ;;  %v2545_v36 = vld [vmem:[#allocation14] sm:$0xff] }
 0x1e0   : > { %1608 = vmatpush.bf16.msra.mxu0 %v2546_v35 }
 0x1e1   : > { %v1128_v53 = vadd.f32 %v2744_v42, %v1113_v46 }
 0x1e3   : > { %v1134_v60 = vmax.f32 %v1128_v53, 0.0 }
 0x1e4   : > { %1609 = vmatpush.bf16.msra.mxu0 %v2545_v36 }
 0x1e6   : > { %v1042_v38 = vpop.f32.mrf.mxu1 }
 0x1e7   : > { %v1115_v43 = vadd.f32 %v1114_v37, %v1042_v38 }
 0x1e9   : > { %v1129_v50 = vadd.f32 %v2744_v42, %v1115_v43 }
 0x1eb   : > { %v1135_v57 = vmax.f32 %v1129_v50, 0.0 }
 0x1ed   : > { %v1139_v62 = vpack.c.bf16 %v1135_v57, %v1134_v60 }
 0x1ee   : > { %v1045_v40 = vpop.f32.mrf.mxu1 }
 0x1ef   : > { %v1118_v41 = vadd.f32 %v1117_v39, %v1045_v40 }
 0x1f1   : > { %v1130_v47 = vadd.f32 %v2744_v42, %v1118_v41  ;;  %v2745_v41 = vld [vmem:[%s3797_s9] ss:$0 sm:$0xff] }
 0x1f3   : > { %v1136_v54 = vmax.f32 %v1130_v47, 0.0 }
 0x1f6   : > { %v1047_v45 = vpop.f32.mrf.mxu1 }
 0x1f7   : > { %v1120_v48 = vadd.f32 %v1119_v44, %v1047_v45 }
 0x1f9   : > { %v1131_v51 = vadd.f32 %v2744_v42, %v1120_v48 }
 0x1fb   : > { %v1137_v55 = vmax.f32 %v1131_v51, 0.0 }
 0x1fd   : > { %v1140_v58 = vpack.c.bf16 %v1137_v55, %v1136_v54 }
 0x1ff   : > { %1176 = vmatpush.bf16.msra.mxu3 %v1140_v58 }
 0x203   : > { %1177 = vmatpush.bf16.msra.mxu3 %v1139_v62 }
 0x207   : > { %1178 = vmatpush.bf16.msra.mxu3 %v1138_v1 }
 0x20a   : > { %2273 = vmatmul.msk.bf16.vlgmr.msra.gmra.mxu3 %vm909_vm0, %v2523_v2 }
 0x20b   : > { %1350 = vmatpush.bf16.msrb.mxu3 %v2533_v0 }
 0x20f   : > { %1351 = vmatpush.bf16.msrb.mxu3 %v2532_v3 }
 0x213   : > { %1352 = vmatpush.bf16.msrb.mxu3 %v2531_v4 }
 0x217   : > { %1353 = vmatpush.bf16.msrb.mxu3 %v2530_v5 }
 0x21a   : > { %2274 = vmatmul.msk.bf16.gmra.mxu3 %vm909_vm0, %v2524_v7  ;;  %v2542_v7 = vld [vmem:[%s3604_s27] sm:$0xff] }
 0x21b   : > { %1354 = vmatpush.bf16.msrb.mxu3 %v2529_v6 }
 0x21f   : > { %1355 = vmatpush.bf16.msrb.mxu3 %v2528_v8  ;;  %v2543_v8 = vld [vmem:[%s3604_s27 + $0x8] sm:$0xff] }
 0x223   : > { %1356 = vmatpush.bf16.msrb.mxu3 %v2527_v9  ;;  %v2544_v9 = vld [vmem:[%s3604_s27 + $0x10] sm:$0xff]  ;;  %s1906_s27 = scalar_lea.hbm %s3800_s1, %s2592_s14 }
 0x224   : > { %s1909_s5 = sshll.u32 %s1906_s27, 4  ;;  %s1910_s5 = int_to_ptr.hbm [resolvable:$true] %s1909_s5 }
 0x225   : > { %s3152_s17 = sshra.s32 %s1910_s5, 4  ;;  %s3153_s17 = int_to_ptr.hbm [resolvable:$true] %s3152_s17 }
 0x226   : > { %s3154_s29 = scalar_lea.hbm %s3153_s17, 48  ;;  %p3159_p10 = scmp.lt.s32.totalorder %s3153_s17, %s3800_s1 }
 0x227   : > { %1357 = vmatpush.bf16.msrb.mxu3 %v2526_v10  ;;  %v2560_v10 = vld [vmem:[#allocation20 + $0x38] sm:$0xff]  ;;  %p3155_p7 = scmp.ne.s32.totalorder %s3153_s17, %s3154_s29  ;;  %p3160_p3 = scmp.lt.s32.totalorder %s3158_s30, %s3154_s29 }
 0x228   : > { %1530 = vmatpush.bf16.msrb.mxu2 %v2560_v10  ;;  %v2577_v10 = vld [vmem:[#allocation22 + $0x28] sm:$0xff] }
 0x229   : > { %p3156_p9 = pnand %p3155_p7, %p3426_p2  ;;  %p3161_p6 = por %p3160_p3, %p3159_p10 }
 0x22a   : > { %2275 = vmatmul.msk.bf16.gmra.mxu3 %vm909_vm0, %v2525_v11  ;;  %v2559_v11 = vld [vmem:[#allocation20 + $0x30] sm:$0xff] }
 0x22b   : > { %p3157_p5 = pneg %p3156_p9 }
 0x22c   : > { %1531 = vmatpush.bf16.msrb.mxu2 %v2559_v11  ;;  %v2576_v11 = vld [vmem:[#allocation22 + $0x20] sm:$0xff] }
 0x22d   : > { %p3162_p8 = pnand %p3161_p6, %p3157_p5 }
 0x230   : > { %1532 = vmatpush.bf16.msrb.mxu2 %v2558_v12  ;;  %v2575_v12 = vld [vmem:[#allocation22 + $0x18] sm:$0xff] }
 0x234   : > { %1533 = vmatpush.bf16.msrb.mxu2 %v2557_v13  ;;  %v2574_v13 = vld [vmem:[#allocation22 + $0x10] sm:$0xff] }
 0x238   : > { %1534 = vmatpush.bf16.msrb.mxu2 %v2556_v14  ;;  %v2573_v14 = vld [vmem:[#allocation22 + $0x8] sm:$0xff] }
 0x23a   : > { %1358 = vmatmul.bf16.vlgmr.msrb.gmra.mxu3 %v1138_v1 }
 0x23c   : > { %1535 = vmatpush.bf16.msrb.mxu2 %v2555_v15  ;;  %v2572_v15 = vld [vmem:[#allocation22] sm:$0xff] }
 0x240   : > { %1536 = vmatpush.bf16.msrb.mxu2 %v2554_v16 }
 0x244   : > { %1537 = vmatpush.bf16.msrb.mxu2 %v2553_v17 }
 0x24a   : > { %1363 = vmatmul.bf16.gmra.mxu3 %v1139_v62 }
 0x25a   : > { %1368 = vmatmul.bf16.gmra.mxu3 %v1140_v58 }
 0x28d   : > { %v1180_v20 = vpop.f32.mrf.mxu3 }
 0x295   : > { %v1182_v21 = vpop.f32.mrf.mxu3 }
 0x296   : > { %v1211_v22 = vpack.c.bf16 %v1182_v21, %v1180_v20  ;;  %v2571_v21 = vld [vmem:[#allocation16 + $0x38] sm:$0xff] }
 0x297   : > { %1854 = vmatpush.bf16.msra.mxu2 %v2571_v21 }
 0x298   : > { %1286 = vmatmul.bf16.vlgmr.msrb.gmra.mxu0 %v1211_v22  ;;  %v2570_v22 = vld [vmem:[#allocation16 + $0x30] sm:$0xff] }
 0x29b   : > { %1855 = vmatpush.bf16.msra.mxu2 %v2570_v22 }
 0x29d   : > { %v1185_v23 = vpop.f32.mrf.mxu3 }
 0x2a5   : > { %v1187_v24 = vpop.f32.mrf.mxu3 }
 0x2a6   : > { %v1212_v25 = vpack.c.bf16 %v1187_v24, %v1185_v23  ;;  %v2569_v24 = vld [vmem:[#allocation16 + $0x28] sm:$0xff] }
 0x2a7   : > { %1856 = vmatpush.bf16.msra.mxu2 %v2569_v24 }
 0x2a8   : > { %1291 = vmatmul.bf16.gmra.mxu0 %v1212_v25  ;;  %v2568_v25 = vld [vmem:[#allocation16 + $0x20] sm:$0xff] }
 0x2ab   : > { %1857 = vmatpush.bf16.msra.mxu2 %v2568_v25 }
 0x2ad   : > { %v1190_v26 = vpop.f32.mrf.mxu3 }
 0x2af   : > { %1858 = vmatpush.bf16.msra.mxu2 %v2567_v31 }
 0x2b3   : > { %1859 = vmatpush.bf16.msra.mxu2 %v2566_v32 }
 0x2b5   : > { %v1192_v27 = vpop.f32.mrf.mxu3 }
 0x2b6   : > { %v1213_v28 = vpack.c.bf16 %v1192_v27, %v1190_v26 }
 0x2b7   : > { %1860 = vmatpush.bf16.msra.mxu2 %v2565_v33 }
 0x2b8   : > { %1296 = vmatmul.bf16.gmra.mxu0 %v1213_v28 }
 0x2bb   : > { %1861 = vmatpush.bf16.msra.mxu2 %v2564_v34 }
 0x2bd   : > { %v1359_v37 = vpop.f32.mrf.mxu3 }
 0x2c5   : > { %v1361_v38 = vpop.f32.mrf.mxu3 }
 0x2cd   : > { %v1364_v45 = vpop.f32.mrf.mxu3 }
 0x2d5   : > { %v1366_v51 = vpop.f32.mrf.mxu3 }
 0x2dd   : > { %v1369_v59 = vpop.f32.mrf.mxu3 }
 0x2e5   : > { %v1371_v63 = vpop.f32.mrf.mxu3 }
 0x315   : > { %v1287_v39 = vpop.f32.mrf.mxu0 }
 0x316   : > { %v1360_v40 = vadd.f32 %v1359_v37, %v1287_v39  ;;  %v2746_v39 = vld [vmem:[%s3798_s21] ss:$0 sm:$0xff] }
 0x318   : > { %v1378_v43 = vadd.f32 %v2745_v41, %v1360_v40 }
 0x31a   : > { %v1384_v47 = vmax.f32 %v1378_v43, 0.0 }
 0x31d   : > { %v1289_v42 = vpop.f32.mrf.mxu0 }
 0x31e   : > { %v1362_v44 = vadd.f32 %v1361_v38, %v1289_v42 }
 0x320   : > { %v1379_v46 = vadd.f32 %v2745_v41, %v1362_v44 }
 0x322   : > { %v1385_v48 = vmax.f32 %v1379_v46, 0.0 }
 0x324   : > { %v1390_v49 = vpack.c.bf16 %v1385_v48, %v1384_v47 }
 0x325   : > { %v1292_v50 = vpop.f32.mrf.mxu0 }
 0x326   : > { %1610 = vmatmul.bf16.vlgmr.msra.gmra.mxu0 %v1390_v49  ;;  %v1365_v52 = vadd.f32 %v1364_v45, %v1292_v50 }
 0x328   : > { %v1380_v54 = vadd.f32 %v2745_v41, %v1365_v52 }
 0x32a   : > { %v1386_v57 = vmax.f32 %v1380_v54, 0.0 }
 0x32d   : > { %v1294_v53 = vpop.f32.mrf.mxu0 }
 0x32e   : > { %v1367_v55 = vadd.f32 %v1366_v51, %v1294_v53 }
 0x330   : > { %v1381_v56 = vadd.f32 %v2745_v41, %v1367_v55 }
 0x332   : > { %v1387_v58 = vmax.f32 %v1381_v56, 0.0 }
 0x334   : > { %v1391_v60 = vpack.c.bf16 %v1387_v58, %v1386_v57 }
 0x335   : > { %v1297_v61 = vpop.f32.mrf.mxu0 }
 0x336   : > { %1615 = vmatmul.bf16.gmra.mxu0 %v1391_v60  ;;  %v1370_v62 = vadd.f32 %v1369_v59, %v1297_v61 }
 0x338   : > { %v1382_v1 = vadd.f32 %v2745_v41, %v1370_v62 }
 0x33a   : > { %v1388_v4 = vmax.f32 %v1382_v1, 0.0 }
 0x33d   : > { %v1299_v0 = vpop.f32.mrf.mxu0 }
 0x33e   : > { %v1372_v2 = vadd.f32 %v1371_v63, %v1299_v0 }
 0x340   : > { %v1383_v3 = vadd.f32 %v2745_v41, %v1372_v2 }
 0x342   : > { %v1389_v5 = vmax.f32 %v1383_v3, 0.0 }
 0x344   : > { %v1392_v6 = vpack.c.bf16 %v1389_v5, %v1388_v4  ;;  %v2561_v5 = vld [vmem:[%s3610_s11] sm:$0xff] }
 0x346   : > { %1428 = vmatpush.bf16.msrb.mxu1 %v1392_v6  ;;  %1620 = vmatmul.bf16.gmra.mxu0 %v1392_v6  ;;  %v2562_v6 = vld [vmem:[%s3610_s11 + $0x8] sm:$0xff] }
 0x34a   : > { %1429 = vmatpush.bf16.msrb.mxu1 %v1391_v60 }
 0x34e   : > { %1430 = vmatpush.bf16.msrb.mxu1 %v1390_v49 }
 0x351   : > { %2352 = vmatmul.msk.bf16.vlgmr.msrb.gmra.mxu1 %vm909_vm0, %v2542_v7  ;;  %v2563_v7 = vld [vmem:[%s3610_s11 + $0x10] sm:$0xff] }
 0x361   : > { %2353 = vmatmul.msk.bf16.gmra.mxu1 %vm909_vm0, %v2543_v8  ;;  %v2579_v8 = vld [vmem:[#allocation22 + $0x38] sm:$0xff] }
 0x362   : > { %1782 = vmatpush.bf16.msra.mxu1 %v2579_v8 }
 0x371   : > { %2354 = vmatmul.msk.bf16.gmra.mxu1 %vm909_vm0, %v2544_v9  ;;  %v2578_v9 = vld [vmem:[#allocation22 + $0x30] sm:$0xff] }
 0x372   : > { %1783 = vmatpush.bf16.msra.mxu1 %v2578_v9 }
 0x376   : > { %1784 = vmatpush.bf16.msra.mxu1 %v2577_v10 }
 0x37a   : > { %1785 = vmatpush.bf16.msra.mxu1 %v2576_v11 }
 0x37e   : > { %1786 = vmatpush.bf16.msra.mxu1 %v2575_v12 }
 0x382   : > { %1787 = vmatpush.bf16.msra.mxu1 %v2574_v13 }
 0x386   : > { %1788 = vmatpush.bf16.msra.mxu1 %v2573_v14 }
 0x38a   : > { %1789 = vmatpush.bf16.msra.mxu1 %v2572_v15 }
 0x3a3   : > { %v1611_v35 = vpop.f32.mrf.mxu0 }
 0x3ab   : > { %v1613_v36 = vpop.f32.mrf.mxu0 }
 0x3b3   : > { %v1616_v43 = vpop.f32.mrf.mxu0 }
 0x3bb   : > { %v1618_v49 = vpop.f32.mrf.mxu0 }
 0x3c3   : > { %v1621_v57 = vpop.f32.mrf.mxu0 }
 0x3cb   : > { %v1623_v61 = vpop.f32.mrf.mxu0 }
 0x3ce   : > { %v1432_v18 = vpop.f32.mrf.mxu1 }
 0x3d6   : > { %v1434_v19 = vpop.f32.mrf.mxu1 }
 0x3d7   : > { %v1463_v20 = vpack.c.bf16 %v1434_v19, %v1432_v18 }
 0x3d9   : > { %1538 = vmatmul.bf16.vlgmr.msrb.gmra.mxu2 %v1463_v20 }
 0x3de   : > { %v1437_v23 = vpop.f32.mrf.mxu1 }
 0x3e6   : > { %v1439_v26 = vpop.f32.mrf.mxu1 }
 0x3e7   : > { %v1464_v27 = vpack.c.bf16 %v1439_v26, %v1437_v23  ;;  %v2747_v26 = vld [vmem:[%s3799_s20] ss:$0 sm:$0xff] }
 0x3e9   : > { %1543 = vmatmul.bf16.gmra.mxu2 %v1464_v27 }
 0x3ee   : > { %v1442_v28 = vpop.f32.mrf.mxu1 }
 0x3f6   : > { %v1444_v29 = vpop.f32.mrf.mxu1 }
 0x3f7   : > { %v1465_v30 = vpack.c.bf16 %v1444_v29, %v1442_v28 }
 0x3f9   : > { %1548 = vmatmul.bf16.gmra.mxu2 %v1465_v30 }
 0x45c   : > { %v1539_v37 = vpop.f32.mrf.mxu2 }
 0x45d   : > { %v1612_v38 = vadd.f32 %v1611_v35, %v1539_v37 }
 0x45f   : > { %v1630_v41 = vadd.f32 %v2746_v39, %v1612_v38 }
 0x461   : > { %v1636_v45 = vmax.f32 %v1630_v41, 0.0 }
 0x464   : > { %v1541_v40 = vpop.f32.mrf.mxu2 }
 0x465   : > { %v1614_v42 = vadd.f32 %v1613_v36, %v1541_v40 }
 0x467   : > { %v1631_v44 = vadd.f32 %v2746_v39, %v1614_v42 }
 0x469   : > { %v1637_v46 = vmax.f32 %v1631_v44, 0.0 }
 0x46b   : > { %v1642_v47 = vpack.c.bf16 %v1637_v46, %v1636_v45 }
 0x46c   : > { %v1544_v48 = vpop.f32.mrf.mxu2 }
 0x46d   : > { %1862 = vmatmul.bf16.vlgmr.msra.gmra.mxu2 %v1642_v47  ;;  %v1617_v50 = vadd.f32 %v1616_v43, %v1544_v48 }
 0x46f   : > { %v1632_v52 = vadd.f32 %v2746_v39, %v1617_v50 }
 0x471   : > { %v1638_v55 = vmax.f32 %v1632_v52, 0.0 }
 0x474   : > { %v1546_v51 = vpop.f32.mrf.mxu2 }
 0x475   : > { %v1619_v53 = vadd.f32 %v1618_v49, %v1546_v51 }
 0x477   : > { %v1633_v54 = vadd.f32 %v2746_v39, %v1619_v53 }
 0x479   : > { %v1639_v56 = vmax.f32 %v1633_v54, 0.0 }
 0x47b   : > { %v1643_v58 = vpack.c.bf16 %v1639_v56, %v1638_v55 }
 0x47c   : > { %v1549_v59 = vpop.f32.mrf.mxu2 }
 0x47d   : > { %1867 = vmatmul.bf16.gmra.mxu2 %v1643_v58  ;;  %v1622_v60 = vadd.f32 %v1621_v57, %v1549_v59 }
 0x47f   : > { %v1634_v63 = vadd.f32 %v2746_v39, %v1622_v60 }
 0x481   : > { %v1640_v2 = vmax.f32 %v1634_v63, 0.0 }
 0x484   : > { %v1551_v62 = vpop.f32.mrf.mxu2 }
 0x485   : > { %v1624_v0 = vadd.f32 %v1623_v61, %v1551_v62 }
 0x487   : > { %v1635_v1 = vadd.f32 %v2746_v39, %v1624_v0 }
 0x489   : > { %v1641_v3 = vmax.f32 %v1635_v1, 0.0 }
 0x48b   : > { %v1644_v4 = vpack.c.bf16 %v1641_v3, %v1640_v2 }
 0x48d   : > { %1680 = vmatpush.bf16.msra.mxu3 %v1644_v4  ;;  %1872 = vmatmul.bf16.gmra.mxu2 %v1644_v4 }
 0x491   : > { %1681 = vmatpush.bf16.msra.mxu3 %v1643_v58 }
 0x495   : > { %1682 = vmatpush.bf16.msra.mxu3 %v1642_v47 }
 0x498   : > { %2431 = vmatmul.msk.bf16.vlgmr.msra.gmra.mxu3 %vm909_vm0, %v2561_v5 }
 0x4a8   : > { %2432 = vmatmul.msk.bf16.gmra.mxu3 %vm909_vm0, %v2562_v6 }
 0x4b8   : > { %2433 = vmatmul.msk.bf16.gmra.mxu3 %vm909_vm0, %v2563_v7 }
 0x4f0   : > { %v1863_v25 = vpop.f32.mrf.mxu2 }
 0x4f8   : > { %v1865_v27 = vpop.f32.mrf.mxu2 }
 0x500   : > { %v1868_v33 = vpop.f32.mrf.mxu2 }
 0x508   : > { %v1870_v38 = vpop.f32.mrf.mxu2 }
 0x510   : > { %v1873_v42 = vpop.f32.mrf.mxu2 }
 0x518   : > { %v1875_v46 = vpop.f32.mrf.mxu2 }
 0x51b   : > { %v1684_v16 = vpop.f32.mrf.mxu3 }
 0x523   : > { %v1686_v17 = vpop.f32.mrf.mxu3 }
 0x524   : > { %v1715_v18 = vpack.c.bf16 %v1686_v17, %v1684_v16 }
 0x526   : > { %1790 = vmatmul.bf16.vlgmr.msra.gmra.mxu1 %v1715_v18 }
 0x52b   : > { %v1689_v19 = vpop.f32.mrf.mxu3 }
 0x533   : > { %v1691_v20 = vpop.f32.mrf.mxu3 }
 0x534   : > { %v1716_v21 = vpack.c.bf16 %v1691_v20, %v1689_v19 }
 0x536   : > { %1795 = vmatmul.bf16.gmra.mxu1 %v1716_v21 }
 0x53b   : > { %v1694_v22 = vpop.f32.mrf.mxu3 }
 0x543   : > { %v1696_v23 = vpop.f32.mrf.mxu3 }
 0x544   : > { %v1717_v24 = vpack.c.bf16 %v1696_v23, %v1694_v22 }
 0x546   : > { %1800 = vmatmul.bf16.gmra.mxu1 %v1717_v24 }
 0x5a3   : > { %v1791_v28 = vpop.f32.mrf.mxu1 }
 0x5a4   : > { %v1864_v29 = vadd.f32 %v1863_v25, %v1791_v28 }
 0x5a6   : > { %v1882_v30 = vadd.f32 %v2747_v26, %v1864_v29 }
 0x5a8   : > { %1888 = vst [vmem:[%s3665_s13] sm:$0xff] %v1882_v30 }
 0x5ab   : > { %v1793_v31 = vpop.f32.mrf.mxu1 }
 0x5ac   : > { %v1866_v32 = vadd.f32 %v1865_v27, %v1793_v31 }
 0x5ae   : > { %v1883_v34 = vadd.f32 %v2747_v26, %v1866_v32 }
 0x5b0   : > { %1889 = vst [vmem:[%s3665_s13 + $0x8] sm:$0xff] %v1883_v34 }
 0x5b3   : > { %v1796_v35 = vpop.f32.mrf.mxu1 }
 0x5b4   : > { %v1869_v36 = vadd.f32 %v1868_v33, %v1796_v35 }
 0x5b6   : > { %v1884_v37 = vadd.f32 %v2747_v26, %v1869_v36 }
 0x5b8   : > { %1890 = vst [vmem:[%s3665_s13 + $0x10] sm:$0xff] %v1884_v37 }
 0x5bb   : > { %v1798_v39 = vpop.f32.mrf.mxu1 }
 0x5bc   : > { %v1871_v40 = vadd.f32 %v1870_v38, %v1798_v39 }
 0x5be   : > { %v1885_v41 = vadd.f32 %v2747_v26, %v1871_v40 }
 0x5c0   : > { %1891 = vst [vmem:[%s3665_s13 + $0x18] sm:$0xff] %v1885_v41 }
 0x5c3   : > { %v1801_v43 = vpop.f32.mrf.mxu1 }
 0x5c4   : > { %v1874_v44 = vadd.f32 %v1873_v42, %v1801_v43 }
 0x5c6   : > { %v1886_v45 = vadd.f32 %v2747_v26, %v1874_v44 }
 0x5c8   : > { %1892 = vst [vmem:[%s3665_s13 + $0x20] sm:$0xff] %v1886_v45 }
 0x5cb   : > { %v1803_v47 = vpop.f32.mrf.mxu1 }
 0x5cc   : > { %v1876_v48 = vadd.f32 %v1875_v46, %v1803_v47 }
 0x5ce   : > { %v1887_v49 = vadd.f32 %v2747_v26, %v1876_v48 }
 0x5d0   : > { %1893 = vst [vmem:[%s3665_s13 + $0x28] sm:$0xff] %v1887_v49 }
 0x5d1   : > { %3165 = shalt.err (!%p3162_p8)
}
 0x5d2   : > { %s3240_s7 = smov 128   ;;  %s3241_s22 = smov 8  }
 0x5d3   : > { %2635 = dma.vmem_to_hbm [thread:$0]  (%p3426_p2), %s1908_s23, 768, %s1910_s5, %s1895_s25, %s3240_s7, %s3240_s7, %s3241_s22  }
 0x5d4 PF: > { %s3802_s24 = sld [smem:[#allocation34_spill]] }
 0x5d5   : > { %s3803_s16 = sld [smem:[#allocation32_spill]] }
 0x5da   : > { %p2699_p12 = scmp.ge.s32.totalorder %s3802_s24, 2 }
 0x5db   : > { %s1924_s13 = sand.u32 1, %s3803_s16  }
 0x5dc   : > { %p2679_p13 = pnand %p2699_p12, %p3430_p4  ;;  %s1925_s14 = scalar_lea.sflag [#allocation4], %s1924_s13 }
 0x5de   : > { %p2680_p0 = pneg %p2679_p13 }
 0x5e0   : > { %3211 = dma.done.wait (%p2680_p0), %s1925_s14, 768  }
 0x5e1   : > { %3213 = vsyncadd (%p2680_p0), %s1925_s14, 4294966528  ;;  %s3805_s27 = sld [smem:[#allocation37_spill]]  ;;  %s3808_s25 = smov %s3224_s26 }
 0x5e2   : > { %s3806_s24 = sld [smem:[#allocation33_spill]] }
 0x5e3   : > { %s3807_s0 = sld [smem:[#allocation38_spill]] }
 0x5e7   : > { %p40_p11 = scmp.ge.s32.totalorder %s3805_s27, 6  }
 0x5e9   : > { %s3809_s26 = smov %s3807_s0  ;;  %42 = sbr.rel (!%p40_p11) target bundleno = 25 (0x19), region = 213 }
 0x5ee   :  { %1931 = vsyncpa [#allocation3], 1 }
 0x5ef   :  { %1933 = vsyncpa [#allocation3 + $0x1], 1 }
 0x5f0   :  { %1934 = vsyncpa [#allocation6], 1 }
 0x5f1   :  { %1936 = vsyncpa [#allocation6 + $0x1], 1 }
 0x5f2   :  { %1937 = vsyncpa [#allocation9], 1 }
 0x5f3   :  { %1939 = vsyncpa [#allocation9 + $0x1], 1 }
 0x5f4   :  { %1940 = vsyncpa [#allocation12], 1 }
 0x5f5   :  { %1941 = vsyncpa [#allocation15], 1 }
 0x5f6   :  { %1942 = vsyncpa [#allocation18], 1 }
 0x5f7   :  { %1943 = vsyncpa [#allocation21], 1 }
 0x5f8   :  { %1944 = vsyncpa [#allocation4], 1 }
 0x5f9   :  { %1946 = vsyncpa [#allocation4 + $0x1], 1 }

</bundles_post_ra>
